<compile_context>
chip_gen: v7x
topology: tpu7x:2x2x1
jax: 0.10.0
libtpu: 0.0.40
codegen_flags: <defaults>
</compile_context>

<pallas_src>
import functools

import numpy as np

import jax
import jax.numpy as jnp
from jax.experimental import pallas as pl
from jax.experimental.pallas import tpu as pltpu


def _cdiv(a, b):
    return (a + b - 1) // b


def _vmem_capacity_bytes():
    try:
        return int(pltpu.get_tpu_info().vmem_capacity_bytes)
    except Exception:
        return 128 * 1024 * 1024


def _default_num_parts():
    # Chips with two TensorCores sharing one HBM (v4/v5p megacore, v7x) can
    # split this bandwidth-bound sweep across cores via the leading "parallel"
    # grid axis.  Single-TC parts (v5e/v6e) use num_parts=1 (the extra part is
    # pure overhead there).
    try:
        kind = jax.devices()[0].device_kind.lower()
    except Exception:
        return 1
    if any(tag in kind for tag in ("v4", "v5p", "v7", "tpu7")):
        return 2
    return 1


def _bce_ls_kernel(x_ref, t_ref, o_ref, acc_ref, *,
                   label_smoothing, pos_weight, block_rows, lane, steps,
                   rows_total, sub_rows, acc_rows, may_have_pad):
    p = pl.program_id(0)   # TensorCore / partial-sum axis ("parallel")
    s = pl.program_id(1)   # sweep / accumulation axis ("arbitrary")

    @pl.when(s == 0)
    def _init():
        acc_ref[...] = jnp.zeros_like(acc_ref)

    row0 = (p * steps + s) * block_rows            # first (unclamped) global row
    one_m_ls = 1.0 - label_smoothing
    half_ls = 0.5 * label_smoothing

    def elem_loss(xv, tv):
        x = xv.astype(jnp.float32)
        t = tv.astype(jnp.float32)
        ts = t * one_m_ls + half_ls
        # numerically stable softplus(-x) = max(-x, 0) + log1p(exp(-|x|))
        sp_neg_x = jnp.maximum(-x, 0.0) + jnp.log1p(jnp.exp(-jnp.abs(x)))
        if pos_weight is None:
            return (1.0 - ts) * x + sp_neg_x
        return (1.0 - ts) * x + (1.0 + (pos_weight - 1.0) * ts) * sp_neg_x

    if acc_rows == 1:
        # Tiny input: a single monolithic block (never padded in practice).
        loss = elem_loss(x_ref[...], t_ref[...])
        if may_have_pad:
            r_iota = jax.lax.broadcasted_iota(jnp.int32, (block_rows, lane), 0)
            loss = jnp.where(row0 + r_iota < rows_total, loss, 0.0)
        acc_ref[...] += loss.sum(axis=0, keepdims=True)
    else:
        # Stream (sub_rows, lane) chunks out of the VMEM block; the running sum
        # is a loop carry (stays in vregs), so the elementwise chain never
        # materializes block-sized VMEM temps.
        n_sub = block_rows // sub_rows
        r_iota = jax.lax.broadcasted_iota(jnp.int32, (sub_rows, lane), 0)

        def accumulate(masked):
            def step(r0, acc):
                loss = elem_loss(x_ref[pl.ds(r0, sub_rows), :],
                                 t_ref[pl.ds(r0, sub_rows), :])
                if masked:
                    # where-select (not multiply): garbage rows in a ragged
                    # edge block cannot propagate Inf/NaN.
                    loss = jnp.where(row0 + r0 + r_iota < rows_total, loss, 0.0)
                return acc + loss

            acc0 = jnp.zeros((sub_rows, lane), jnp.float32)
            if n_sub <= 8:
                block_acc = acc0
                for i in range(n_sub):
                    block_acc = step(i * sub_rows, block_acc)
            else:
                block_acc = jax.lax.fori_loop(
                    0, n_sub,
                    lambda i, acc: step(
                        pl.multiple_of(i * sub_rows, sub_rows), acc),
                    acc0, unroll=8)
            # Fold into the (8, lane) accumulator with pure VPU adds.
            acc_ref[...] += block_acc.reshape(sub_rows // 8, 8, lane).sum(axis=0)

        if may_have_pad:
            # Only edge / overflow blocks pay for the row mask.
            @pl.when(row0 + block_rows <= rows_total)
            def _interior():
                accumulate(False)

            @pl.when(row0 + block_rows > rows_total)
            def _edge():
                accumulate(True)
        else:
            accumulate(False)

    @pl.when(s == steps - 1)
    def _finalize():
        o_ref[...] = acc_ref[...]


def bce_with_logits_label_smooth(x, target, *, label_smoothing=0.05,
                                 pos_weight=None, num_parts=None):
    """Mean BCE-with-logits loss with label smoothing via a Pallas TPU kernel.

    Accepts arbitrary (matching) shapes; bf16/f32 inputs stream at native
    width (upcast to f32 inside the kernel).  For bf16 models, pass the target
    already narrowed at the producer to avoid extra HBM bytes.
    """
    if x.shape != target.shape:
        raise ValueError("input and target must have the same shape")

    # pos_weight: scalar only.
    # TODO(synk): support per-class (broadcastable) pos_weight tensors.
    if pos_weight is not None:
        pw = np.asarray(pos_weight)
        if pw.size != 1:
            raise NotImplementedError("only scalar pos_weight is supported")
        pos_weight = float(pw.reshape(()))

    # dtype plumbing: f32 / bf16 pass through (kernel upcasts); others cast once.
    if x.dtype not in (jnp.float32, jnp.bfloat16):
        x = x.astype(jnp.float32)
    if target.dtype not in (jnp.float32, jnp.bfloat16):
        target = target.astype(x.dtype)

    total = int(x.size)
    if total == 0:
        return jnp.float32(float("nan"))   # torch.mean of an empty tensor

    # ---- Zero-copy 2-D slab view (pure reshape of a contiguous array; no
    # jnp.pad / slice, so no extra HBM round trip of the inputs). ----
    if total % 512 == 0:
        lane = 512
    elif total % 256 == 0:
        lane = 256
    elif total % 128 == 0:
        lane = 128
    elif x.ndim >= 2:
        lane = x.shape[-1]          # keep the model's class dim on lanes
    else:
        lane = total
    rows = total // lane
    x2 = x.reshape(rows, lane)
    t2 = target.reshape(rows, lane)

    # ---- Block sizing (generation & dtype aware). ----
    vmem_cap = _vmem_capacity_bytes()
    per_input_target = (8 << 20) if vmem_cap >= (96 << 20) else (4 << 20)
    itemsizes = (x2.dtype.itemsize, t2.dtype.itemsize)
    row_align = 8 if min(itemsizes) >= 4 else 16     # bf16 packs 16 sublanes/tile
    sub_rows = row_align                             # in-kernel streaming chunk

    max_block_rows = max(per_input_target // (lane * min(itemsizes)), row_align)
    row_bytes_both = lane * sum(itemsizes)
    max_block_rows = min(max_block_rows,
                         max((vmem_cap // 2) // (2 * row_bytes_both), row_align))

    if rows < 8:
        block_rows = rows
    else:
        block_rows = min(max_block_rows, rows)
        block_rows = max((block_rows // row_align) * row_align, row_align)
        if block_rows >= rows:
            block_rows = rows        # a single full-extent block is always legal

    if block_rows % 8 == 0 and block_rows >= sub_rows and block_rows % sub_rows == 0:
        acc_rows = 8
    else:
        acc_rows = 1                 # tiny single-block path
        sub_rows = block_rows

    nblocks = _cdiv(rows, block_rows)
    if num_parts is None:
        num_parts = _default_num_parts()
    num_parts = max(1, min(int(num_parts), nblocks))
    steps = _cdiv(nblocks, num_parts)
    may_have_pad = (num_parts * steps * block_rows) != rows

    kernel = functools.partial(
        _bce_ls_kernel,
        label_smoothing=float(label_smoothing),
        pos_weight=pos_weight,
        block_rows=block_rows, lane=lane, steps=steps, rows_total=rows,
        sub_rows=sub_rows, acc_rows=acc_rows, may_have_pad=may_have_pad)

    if num_parts * steps == nblocks:
        in_index = lambda p, s: (p * steps + s, 0)
    else:
        # Clamp so a (rare) grid step past the last real block just re-reads
        # the final block; its contribution is fully masked out in-kernel.
        in_index = lambda p, s: (jnp.minimum(p * steps + s, nblocks - 1), 0)
    in_block = pl.BlockSpec((block_rows, lane), in_index)

    # Double-buffered input blocks + headroom; stay clear of the physical
    # budget (64 MiB/TC on v7x, 128 MiB on v5e/v6e).
    in_bytes = block_rows * lane * sum(itemsizes)
    vmem_limit = 2 * in_bytes + (16 << 20)
    vmem_limit = min(max(vmem_limit, 24 << 20), max(vmem_cap - (16 << 20), 24 << 20))

    partials = pl.pallas_call(
        kernel,
        out_shape=jax.ShapeDtypeStruct((num_parts, acc_rows, lane), jnp.float32),
        grid_spec=pltpu.PrefetchScalarGridSpec(
            num_scalar_prefetch=0,
            grid=(num_parts, steps),
            in_specs=[in_block, in_block],
            out_specs=pl.BlockSpec((None, acc_rows, lane), lambda p, s: (p, 0, 0)),
            scratch_shapes=[pltpu.VMEM((acc_rows, lane), jnp.float32)],
        ),
        compiler_params=pltpu.CompilerParams(
            # On 2-TC chips the leading axis is intended to split across cores.
            # TODO(synk): if xprof shows one idle TensorCore on v7x, switch this
            # axis to pltpu.CORE_PARALLEL (or pl.core_map over a TC mesh).
            dimension_semantics=("parallel", "arbitrary"),
            vmem_limit_bytes=int(vmem_limit),
        ),
    )(x2, t2)

    # Tiny final reduction of the per-core (acc_rows, lane) partials in plain
    # JAX; divide by the TRUE element count.  (Accumulation order differs from
    # a flat mean; fine in f32 at these tolerances.)
    return jnp.sum(partials) / total


def _reference(x, target, label_smoothing=0.05, pos_weight=None):
    x = x.astype(jnp.float32)
    t = target.astype(jnp.float32)
    ts = t * (1.0 - label_smoothing) + 0.5 * label_smoothing
    sp_neg_x = jnp.maximum(-x, 0.0) + jnp.log1p(jnp.exp(-jnp.abs(x)))
    pw = 1.0 if pos_weight is None else float(pos_weight)
    loss = (1.0 - ts) * x + (1.0 + (pw - 1.0) * ts) * sp_neg_x
    return jnp.mean(loss)


if __name__ == "__main__":
    key = jax.random.PRNGKey(0)
    ks = jax.random.split(key, 10)

    # Case 1: (2, 4, 16, 16) f32 logits, binary targets, no pos_weight.
    shape1 = (2, 4, 16, 16)
    x1 = jax.random.normal(ks[0], shape1, dtype=jnp.float32) * 2.0
    t1 = (jax.random.uniform(ks[1], shape1) > 0.5).astype(jnp.float32)
    out1 = jax.block_until_ready(
        bce_with_logits_label_smooth(x1, t1, label_smoothing=0.05))
    ref1 = _reference(x1, t1, 0.05, None)
    assert jnp.allclose(out1, ref1, rtol=1e-5, atol=1e-6), (out1, ref1)

    # Case 2: ragged (3, 5, 7) with pos_weight=2.0 — non-128 fallback view,
    # edge-row mask, pos_weight branch.
    shape2 = (3, 5, 7)
    x2_ = jax.random.normal(ks[2], shape2, dtype=jnp.float32)
    t2_ = (jax.random.uniform(ks[3], shape2) > 0.5).astype(jnp.float32)
    out2 = jax.block_until_ready(
        bce_with_logits_label_smooth(x2_, t2_, label_smoothing=0.05,
                                     pos_weight=2.0))
    ref2 = _reference(x2_, t2_, 0.05, 2.0)
    assert jnp.allclose(out2, ref2, rtol=1e-5, atol=1e-6), (out2, ref2)

    # Case 3: (33, 129) f32 — multiple grid steps + ragged last row block
    # (interior blocks skip the mask, edge block masks garbage rows).
    shape3 = (33, 129)
    x3 = jax.random.normal(ks[4], shape3, dtype=jnp.float32)
    t3 = jax.random.uniform(ks[5], shape3)        # soft targets are legal too
    out3 = jax.block_until_ready(
        bce_with_logits_label_smooth(x3, t3, label_smoothing=0.1,
                                     pos_weight=0.5))
    ref3 = _reference(x3, t3, 0.1, 0.5)
    assert jnp.allclose(out3, ref3, rtol=1e-5, atol=1e-6), (out3, ref3)

    # Case 4: (512, 1000) f32 — exercises the streamed fori_loop body.
    shape4 = (512, 1000)
    x4 = jax.random.normal(ks[6], shape4, dtype=jnp.float32)
    t4 = (jax.random.uniform(ks[7], shape4) > 0.5).astype(jnp.float32)
    out4 = jax.block_until_ready(
        bce_with_logits_label_smooth(x4, t4, label_smoothing=0.05))
    ref4 = _reference(x4, t4, 0.05, None)
    assert jnp.allclose(out4, ref4, rtol=1e-5, atol=1e-6), (out4, ref4)

    # Case 5: bf16 logits with f32 targets (narrow DMA for x, no extra casts).
    shape5 = (4, 4, 8, 8)
    x5 = jax.random.normal(ks[8], shape5, dtype=jnp.float32).astype(jnp.bfloat16)
    t5 = (jax.random.uniform(ks[9], shape5) > 0.5).astype(jnp.float32)
    out5 = jax.block_until_ready(
        bce_with_logits_label_smooth(x5, t5, label_smoothing=0.1))
    ref5 = _reference(x5, t5, 0.1, None)
    assert jnp.allclose(out5, ref5, rtol=1e-4, atol=1e-5), (out5, ref5)

    print("KERNEL_OK")
</pallas_src>

<mosaic_0001>
module attributes {stable_mosaic.version = 11 : i64} {
  func.func @_bce_ls_kernel(%arg0: i32, %arg1: i32, %arg2: memref<4x512xf32, #tpu.memory_space<vmem>>, %arg3: memref<4x512xf32, #tpu.memory_space<vmem>>, %arg4: memref<1x1x512xf32, #tpu.memory_space<vmem>>, %arg5: memref<1x512xf32, #tpu.memory_space<vmem>>) attributes {dimension_semantics = [#tpu.dimension_semantics<parallel>, #tpu.dimension_semantics<arbitrary>], iteration_bounds = array<i64: 1, 1>, scalar_prefetch = 0 : i64, scratch_operands = 1 : i64, tpu.core_type = #tpu.core_type<tc>, window_params = [{transform_indices = @transform_0, window_bounds = array<i64: 4, 512>}, {transform_indices = @transform_1, window_bounds = array<i64: 4, 512>}, {transform_indices = @transform_2, window_bounds = array<i64: 1, 1, 512>}]} {
    %c0_i32 = arith.constant 0 : i32
    %0 = arith.cmpi eq, %arg1, %c0_i32 : i32
    %1 = arith.extui %0 : i1 to i32
    %c0_i32_0 = arith.constant 0 : i32
    %2 = arith.cmpi ne, %1, %c0_i32_0 : i32
    scf.if %2 {
      %cst_16 = arith.constant 0.000000e+00 : f32
      %31 = vector.broadcast %cst_16 : f32 to vector<1x512xf32>
      %c0_17 = arith.constant 0 : index
      %c0_18 = arith.constant 0 : index
      %32 = vector.load %arg5[%c0_17, %c0_18] : memref<1x512xf32, #tpu.memory_space<vmem>>, vector<1x512xf32>
      tpu.vector_store %arg5[%c0_17, %c0_18], %31 {strides = array<i32>} : memref<1x512xf32, #tpu.memory_space<vmem>>, vector<1x512xf32>,
    } else {
    }
    %c0 = arith.constant 0 : index
    %c0_1 = arith.constant 0 : index
    %3 = vector.load %arg2[%c0, %c0_1] : memref<4x512xf32, #tpu.memory_space<vmem>>, vector<4x512xf32>
    %c0_2 = arith.constant 0 : index
    %c0_3 = arith.constant 0 : index
    %4 = vector.load %arg3[%c0_2, %c0_3] : memref<4x512xf32, #tpu.memory_space<vmem>>, vector<4x512xf32>
    %cst = arith.constant 0.949999988 : f32
    %5 = vector.broadcast %cst : f32 to vector<4x512xf32>
    %6 = arith.mulf %4, %5 : vector<4x512xf32>
    %cst_4 = arith.constant 2.500000e-02 : f32
    %7 = vector.broadcast %cst_4 : f32 to vector<4x512xf32>
    %8 = arith.addf %6, %7 : vector<4x512xf32>
    %cst_5 = arith.constant 0.000000e+00 : f32
    %9 = vector.broadcast %cst_5 : f32 to vector<4x512xf32>
    %10 = arith.subf %9, %3 : vector<4x512xf32>
    %cst_6 = arith.constant 0.000000e+00 : f32
    %11 = vector.broadcast %cst_6 : f32 to vector<4x512xf32>
    %12 = arith.maximumf %10, %11 : vector<4x512xf32>
    %13 = math.absf %3 : vector<4x512xf32>
    %cst_7 = arith.constant 0.000000e+00 : f32
    %14 = vector.broadcast %cst_7 : f32 to vector<4x512xf32>
    %15 = arith.subf %14, %13 : vector<4x512xf32>
    %16 = math.exp %15 : vector<4x512xf32>
    %17 = math.log1p %16 : vector<4x512xf32>
    %18 = arith.addf %12, %17 : vector<4x512xf32>
    %cst_8 = arith.constant 1.000000e+00 : f32
    %19 = vector.broadcast %cst_8 : f32 to vector<4x512xf32>
    %20 = arith.subf %19, %8 : vector<4x512xf32>
    %21 = arith.mulf %20, %3 : vector<4x512xf32>
    %22 = arith.addf %21, %18 : vector<4x512xf32>
    %c0_9 = arith.constant 0 : index
    %c0_10 = arith.constant 0 : index
    %23 = vector.load %arg5[%c0_9, %c0_10] : memref<1x512xf32, #tpu.memory_space<vmem>>, vector<1x512xf32>
    %cst_11 = arith.constant dense<0.000000e+00> : vector<512xf32>
    %24 = vector.multi_reduction <add>, %22, %cst_11 [0] : vector<4x512xf32> to vector<512xf32>
    %25 = vector.shape_cast %24 : vector<512xf32> to vector<1x512xf32>
    %26 = arith.addf %23, %25 : vector<1x512xf32>
    %c0_12 = arith.constant 0 : index
    %c0_13 = arith.constant 0 : index
    %27 = vector.load %arg5[%c0_12, %c0_13] : memref<1x512xf32, #tpu.memory_space<vmem>>, vector<1x512xf32>
    tpu.vector_store %arg5[%c0_12, %c0_13], %26 {strides = array<i32>} : memref<1x512xf32, #tpu.memory_space<vmem>>, vector<1x512xf32>,
    %c0_i32_14 = arith.constant 0 : i32
    %28 = arith.cmpi eq, %arg1, %c0_i32_14 : i32
    %29 = arith.extui %28 : i1 to i32
    %c0_i32_15 = arith.constant 0 : i32
    %30 = arith.cmpi ne, %29, %c0_i32_15 : i32
    scf.if %30 {
      %c0_16 = arith.constant 0 : index
      %c0_17 = arith.constant 0 : index
      %31 = vector.load %arg5[%c0_16, %c0_17] : memref<1x512xf32, #tpu.memory_space<vmem>>, vector<1x512xf32>
      %c0_18 = arith.constant 0 : index
      %c0_19 = arith.constant 0 : index
      %c0_20 = arith.constant 0 : index
      %32 = vector.load %arg4[%c0_18, %c0_19, %c0_20] : memref<1x1x512xf32, #tpu.memory_space<vmem>>, vector<1x1x512xf32>
      %33 = vector.shape_cast %32 : vector<1x1x512xf32> to vector<1x512xf32>
      %34 = vector.shape_cast %31 : vector<1x512xf32> to vector<1x1x512xf32>
      tpu.vector_store %arg4[%c0_18, %c0_19, %c0_20], %34 {strides = array<i32>} : memref<1x1x512xf32, #tpu.memory_space<vmem>>, vector<1x1x512xf32>,
    } else {
    }
    return
  }
  func.func @transform_0(%arg0: i32, %arg1: i32) -> (i32, i32) {
    %c1_i32 = arith.constant 1 : i32
    %0 = arith.muli %arg0, %c1_i32 : i32
    %1 = arith.addi %0, %arg1 : i32
    %c0_i32 = arith.constant 0 : i32
    %c0_i32_0 = arith.constant 0 : i32
    return %1, %c0_i32 : i32, i32
  }
  func.func @transform_1(%arg0: i32, %arg1: i32) -> (i32, i32) {
    %c1_i32 = arith.constant 1 : i32
    %0 = arith.muli %arg0, %c1_i32 : i32
    %1 = arith.addi %0, %arg1 : i32
    %c0_i32 = arith.constant 0 : i32
    %c0_i32_0 = arith.constant 0 : i32
    return %1, %c0_i32 : i32, i32
  }
  func.func @transform_2(%arg0: i32, %arg1: i32) -> (i32, i32, i32) {
    %c0_i32 = arith.constant 0 : i32
    %c0_i32_0 = arith.constant 0 : i32
    %c0_i32_1 = arith.constant 0 : i32
    return %arg0, %c0_i32, %c0_i32_0 : i32, i32, i32
  }
}

</mosaic_0001>

<bundles_post_ra>
// kernel: tpu_custom_call.1
= control target key start
LH: loop header
LB: loop body
LE: loop exit
PB: predicated region body
PF: predicated region fallthrough
CT: control target
= control target key end

     0   :  { %7 = vsyncpa [#allocation4], 0  ;;  %s346_s0 = inlined_call_operand.hbm [shape: f32[4,512], index: 0, kind: input, shape index: {}]   ;;  %s347_s1 = inlined_call_operand.hbm [shape: f32[4,512], index: 1, kind: input, shape index: {}]   ;;  %s348_s2 = inlined_call_operand.hbm [shape: f32[1,1,512], index: 2, kind: output, shape index: {}]  }
   0x1   :  { %8 = vsyncpa [#allocation7], 0 }
   0x2   :  { %9 = vsyncpa [#allocation5], 0  ;;  %s278_s9 = smov [#allocation3]   ;;  %s279_s11 = smov [#allocation6]  }
   0x3   :  { %s20_s10 = sshll.u32 %s278_s9, 4  ;;  %s34_s12 = sshll.u32 %s279_s11, 4  ;;  %s21_s10 = int_to_ptr.vmem [resolvable:$true] %s20_s10  ;;  %s35_s12 = int_to_ptr.vmem [resolvable:$true] %s34_s12 }
   0x4   :  { %s206_s15 = scalar_lea.hbm %s346_s0, 256 }
   0x5   :  { %p207_p0 = scmp.ne.s32.totalorder %s346_s0, %s206_s15  ;;  %p210_p1 = scmp.lt.u32.totalorder %s206_s15, %s346_s0 }
   0x7   :  { %p212_p2 = pnand %p210_p1, %p207_p0 }
   0x9   :  { %215 = shalt.err (!%p212_p2)
}
   0xa   :  { %s216_s20 = scalar_lea.vmem %s21_s10, 256  ;;  %p221_p4 = scmp.lt.s32.totalorder %s21_s10, %s21_s10 }
   0xb   :  { %p217_p3 = scmp.ne.s32.totalorder %s21_s10, %s216_s20  ;;  %p222_p5 = scmp.lt.s32.totalorder %s216_s20, %s216_s20 }
   0xd   :  { %p223_p6 = por %p222_p5, %p221_p4 }
   0xf   :  { %p224_p7 = pnand %p223_p6, %p217_p3 }
  0x11   :  { %227 = shalt.err (!%p224_p7)
}
  0x12   :  { %23 = dma.hbm_to_vmem [thread:$0]  %s346_s0, 256, %s21_s10, [#allocation4]  }
  0x13   :  { %s228_s25 = scalar_lea.hbm %s347_s1, 256 }
  0x14   :  { %p229_p8 = scmp.ne.s32.totalorder %s347_s1, %s228_s25  ;;  %p232_p9 = scmp.lt.u32.totalorder %s228_s25, %s347_s1 }
  0x16   :  { %p234_p10 = pnand %p232_p9, %p229_p8 }
  0x18   :  { %237 = shalt.err (!%p234_p10)
}
  0x19   :  { %s238_s30 = scalar_lea.vmem %s35_s12, 256  ;;  %p243_p12 = scmp.lt.s32.totalorder %s35_s12, %s35_s12 }
  0x1a   :  { %p239_p11 = scmp.ne.s32.totalorder %s35_s12, %s238_s30  ;;  %p244_p13 = scmp.lt.s32.totalorder %s238_s30, %s238_s30 }
  0x1c   :  { %p245_p0 = por %p244_p13, %p243_p12 }
  0x1e   :  { %p246_p1 = pnand %p245_p0, %p239_p11 }
  0x20   :  { %249 = shalt.err (!%p246_p1)
}
  0x21   :  { %37 = dma.hbm_to_vmem [thread:$0]  %s347_s1, 256, %s35_s12, [#allocation7]  }
  0x22   :  { %272 = dma.done.wait [#allocation4], 256  }
  0x23   :  { %273 = vsyncadd [#allocation4], 4294967040 }
  0x24   :  { %274 = dma.done.wait [#allocation7], 256  }
  0x25   :  { %275 = vsyncadd [#allocation7], 4294967040  ;;  %v50_v0 = vlaneseq  ;;  %v280_v2 = vmov 0.0   ;;  %v55_v3 = vld [vmem:[#allocation3] sm:$0xff]  ;;  %v56_v4 = vld [vmem:[#allocation3 + $0x8] sm:$0xff]  ;;  %vm108_vm3 = vcmask 1043456  }
  0x26   :  { %v67_v5 = vand.u32 2147483647, %v55_v3  ;;  %v68_v6 = vand.u32 2147483647, %v56_v4  ;;  %v57_v12 = vld [vmem:[#allocation6] sm:$0xff]  ;;  %v58_v14 = vld [vmem:[#allocation6 + $0x8] sm:$0xff] }
  0x27   :  { %vm323_vm0 = vcmp.lt.s32.totalorder %v50_v0, 512  ;;  %v59_v17 = vmul.f32 0.95, %v57_v12  ;;  %v60_v18 = vmul.f32 0.95, %v58_v14  ;;  %v63_v24 = vsub.f32 0.0, %v55_v3 }
  0x28   :  { %54 = vst.msk [vmem:[#allocation2] sm:$0xf] %vm323_vm0, %v280_v2  ;;  %v69_v7 = vsub.f32 0.0, %v67_v5  ;;  %v70_v8 = vsub.f32 0.0, %v68_v6  ;;  %v64_v27 = vsub.f32 0.0, %v56_v4  ;;  %s282_s1 = smov [#allocation8]  }
  0x29   :  { %v61_v21 = vadd.f32 0.025, %v59_v17  ;;  %v62_v22 = vadd.f32 0.025, %v60_v18  ;;  %v65_v33 = vmax.f32 %v63_v24, 0.0  ;;  %s183_s4 = sshll.u32 %s282_s1, 4  ;;  %s184_s4 = int_to_ptr.vmem [resolvable:$true] %s183_s4 }
  0x2a   :  { %v71_v9 = vmul.f32 1.442695, %v69_v7  ;;  %v73_v10 = vmul.f32 1.442695, %v70_v8  ;;  %v66_v36 = vmax.f32 %v64_v27, 0.0  ;;  %s250_s5 = scalar_lea.vmem %s184_s4, 64  ;;  %p255_p3 = scmp.lt.s32.totalorder %s184_s4, %s184_s4 }
  0x2b   :  { %v95_v29 = vsub.f32 1.0, %v61_v21  ;;  %v96_v31 = vsub.f32 1.0, %v62_v22  ;;  %v281_v61 = vmov 1966171168   ;;  %p251_p2 = scmp.ne.s32.totalorder %s184_s4, %s250_s5  ;;  %p256_p4 = scmp.lt.s32.totalorder %s250_s5, %s250_s5 }
  0x2c   :  { %198 = vpow2.f32 %v71_v9  ;;  %v144_v62 = vunpack.c.l.s4 %v281_v61 }
  0x2d   :  { %200 = vpow2.f32 %v73_v10  ;;  %v97_v39 = vmul.f32 %v95_v29, %v55_v3  ;;  %v98_v41 = vmul.f32 %v96_v31, %v56_v4  ;;  %v147_v10 = vshrl.u32 %v50_v0, 7  ;;  %p257_p5 = por %p256_p4, %p255_p3 }
  0x2e   :  { %v145_v9 = vunpack.c.0.s8 %v144_v62 }
  0x2f   :  { %p258_p6 = pnand %p257_p5, %p251_p2 }
  0x30   :  { %v148_v18 = vsub.s32 %v145_v9, %v147_v10 }
  0x36   :  { %v199_v11 = vpop.eup %198 }
  0x37   :  { %v201_v13 = vpop.eup %200  ;;  %v75_v15 = vadd.f32 1.0, %v199_v11  ;;  %v78_v19 = vmul.f32 -0.5, %v199_v11  ;;  %v81_v25 = vand.u32 2147483647, %v199_v11 }
  0x38   :  { %v84_v16 = vadd.f32 1.0, %v201_v13  ;;  %v87_v20 = vmul.f32 -0.5, %v201_v13  ;;  %v90_v28 = vand.u32 2147483647, %v201_v13 }
  0x39   :  { %202 = vlog2.f32 %v75_v15  ;;  %v79_v23 = vadd.f32 1.0, %v78_v19  ;;  %vm82_vm1 = vcmp.lt.f32.partialorder %v81_v25, 0.0004427343  ;;  %v101_v25 = vld [vmem:[#allocation2] sm:$0xf] }
  0x3a   :  { %204 = vlog2.f32 %v84_v16  ;;  %v88_v26 = vadd.f32 1.0, %v87_v20  ;;  %vm91_vm2 = vcmp.lt.f32.partialorder %v90_v28, 0.0004427343 }
  0x3b   :  { %v80_v30 = vmul.f32 %v199_v11, %v79_v23 }
  0x3c   :  { %v89_v34 = vmul.f32 %v201_v13, %v88_v26 }
  0x43   :  { %v203_v32 = vpop.eup %202 }
  0x44   :  { %v205_v35 = vpop.eup %204  ;;  %v77_v37 = vmul.f32 0.6931472, %v203_v32 }
  0x45   :  { %v86_v38 = vmul.f32 0.6931472, %v205_v35 }
  0x46   :  { %v83_v40 = vsel %vm82_vm1, %v80_v30, %v77_v37 }
  0x47   :  { %v92_v42 = vsel %vm91_vm2, %v89_v34, %v86_v38  ;;  %v93_v43 = vadd.f32 %v83_v40, %v65_v33 }
  0x48   :  { %v94_v44 = vadd.f32 %v92_v42, %v66_v36 }
  0x49   :  { %v99_v45 = vadd.f32 %v97_v39, %v93_v43 }
  0x4a   :  { %v100_v46 = vadd.f32 %v98_v41, %v94_v44 }
  0x4b   :  { %v104_v47 = vcombine.high %v99_v45, %v99_v45  ;;  %v109_v48 = vsel %vm108_vm3, %v99_v45, 0.0 }
  0x4c   :  { %v105_v49 = vcombine.high %v100_v46, %v100_v46  ;;  %v110_v50 = vrot.slane %v109_v48, 4  ;;  %v123_v51 = vsel %vm108_vm3, %v100_v46, 0.0 }
  0x4d   :  { %v116_v52 = vsel %vm108_vm3, %v104_v47, 0.0  ;;  %v124_v53 = vrot.slane %v123_v51, 4 }
  0x4e   :  { %v111_v54 = vadd.f32 %v110_v50, %v109_v48  ;;  %v117_v55 = vrot.slane %v116_v52, 4  ;;  %v130_v56 = vsel %vm108_vm3, %v105_v49, 0.0 }
  0x4f   :  { %v125_v57 = vadd.f32 %v124_v53, %v123_v51  ;;  %v131_v58 = vrot.slane %v130_v56, 4 }
  0x50   :  { %v112_v59 = vrot.slane %v111_v54, 2  ;;  %v118_v60 = vadd.f32 %v117_v55, %v116_v52 }
  0x51   :  { %v126_v63 = vrot.slane %v125_v57, 2  ;;  %v132_v2 = vadd.f32 %v131_v58, %v130_v56 }
  0x52   :  { %v113_v3 = vadd.f32 %v112_v59, %v111_v54  ;;  %v119_v4 = vrot.slane %v118_v60, 2 }
  0x53   :  { %v127_v5 = vadd.f32 %v126_v63, %v125_v57  ;;  %v133_v6 = vrot.slane %v132_v2, 2 }
  0x54   :  { %v114_v7 = vrot.slane %v113_v3, 1  ;;  %v120_v8 = vadd.f32 %v119_v4, %v118_v60 }
  0x55   :  { %v128_v11 = vrot.slane %v127_v5, 1  ;;  %v134_v12 = vadd.f32 %v133_v6, %v132_v2 }
  0x56   :  { %v115_v13 = vadd.f32 %v114_v7, %v113_v3  ;;  %v121_v14 = vrot.slane %v120_v8, 1 }
  0x57   :  { %v129_v15 = vadd.f32 %v128_v11, %v127_v5  ;;  %v135_v16 = vrot.slane %v134_v12, 1 }
  0x58   :  { %v122_v17 = vadd.f32 %v121_v14, %v120_v8 }
  0x59   :  { %v136_v19 = vadd.f32 %v135_v16, %v134_v12 }
  0x5a   :  { %v141_v20 = vcombine.low %v115_v13, %v122_v17 }
  0x5b   :  { %v142_v21 = vcombine.low %v129_v15, %v136_v19 }
  0x5c   :  { %v149_v22 = vrot.slane %v141_v20, %v148_v18 }
  0x5d   :  { %v156_v23 = vrot.slane %v142_v21, %v148_v18 }
  0x5f   :  { %v157_v24 = vcombine.low %v149_v22, %v156_v23 }
  0x61   :  { %v164_v26 = vrot.slane %v157_v24, %v148_v18 }
  0x63   :  { %v166_v27 = vadd.f32 %v164_v26, %v101_v25 }
  0x65   :  { %171 = vst.msk [vmem:[#allocation2] sm:$0xf] %vm323_vm0, %v166_v27 }
  0x6c   :  { %v175_v0 = vld [vmem:[#allocation2] sm:$0xf] }
  0x6d   :  { %176 = vst.msk [vmem:[#allocation8] sm:$0xf] %vm323_vm0, %v175_v0 }
  0x6e   :  { %261 = shalt.err (!%p258_p6)
}
  0x6f   :  { %s262_s8 = scalar_lea.hbm %s348_s2, 64 }
  0x70   :  { %p263_p7 = scmp.ne.s32.totalorder %s348_s2, %s262_s8  ;;  %p266_p8 = scmp.lt.u32.totalorder %s262_s8, %s348_s2 }
  0x72   :  { %p268_p9 = pnand %p266_p8, %p263_p7 }
  0x74   :  { %271 = shalt.err (!%p268_p9)
}
  0x75   :  { %186 = dma.vmem_to_hbm [thread:$0]  %s184_s4, 64, %s348_s2, [#allocation5]  }
  0x76   :  { %276 = dma.done.wait [#allocation5], 64  }
  0x77   :  { %277 = vsyncadd [#allocation5], 4294967232 }
  0x78   :  { %190 = vsyncpa [#allocation4], 1 }
  0x79   :  { %191 = vsyncpa [#allocation7], 1 }
  0x7a   :  { %192 = vsyncpa [#allocation5], 1 }

</bundles_post_ra>
